<compile_context>
chip_gen: v5e
topology: v5e:2x2
jax: 0.10.0
libtpu: 0.0.40
codegen_flags: <defaults>
</compile_context>

<pallas_src>
import functools

import numpy as np
import jax
import jax.numpy as jnp
from jax import lax
from jax.experimental import pallas as pl
from jax.experimental.pallas import tpu as pltpu


def _round_up(n, m):
    return ((n + m - 1) // m) * m


def mlp2d_kernel(x_ref, w1_ref, b1_ref, w2_ref, b2_ref, w3_ref, b3_ref, o_ref,
                 *, chunk, n_chunks):
    # Weights/biases are grid-invariant residents; load them once per grid step.
    w1 = w1_ref[...]
    b1 = b1_ref[...]
    w2 = w2_ref[...]
    b2 = b2_ref[...]
    w3 = w3_ref[...]
    b3 = b3_ref[...]

    def body(c, carry):
        r = pl.multiple_of(c * chunk, chunk)
        # fc1 + ReLU: bf16 MXU inputs, f32 accumulation (x cast in-kernel; x DMA'd as f32 once).
        x = x_ref[pl.ds(r, chunk), :].astype(w1.dtype)
        h1 = jnp.maximum(jnp.dot(x, w1, preferred_element_type=jnp.float32) + b1, 0.0)
        # fc2 + ReLU
        h2 = jnp.maximum(
            jnp.dot(h1.astype(w2.dtype), w2, preferred_element_type=jnp.float32) + b2, 0.0)
        # dropout: identity in inference mode.
        # TODO(synk): training-mode Dropout(p=0.1) would need pltpu.prng_seed/prng_random_bits;
        # PyTorch's RNG stream cannot be reproduced, so the eval-mode forward is implemented.
        # fc3
        out = jnp.dot(h2.astype(w3.dtype), w3, preferred_element_type=jnp.float32) + b3
        o_ref[pl.ds(r, chunk), :] = out.astype(o_ref.dtype)
        return carry

    lax.fori_loop(0, n_chunks, body, None, unroll=True)


def prepare_mlp2d_params(w1, b1, w2, b2, w3, b3, *, lane_align=128):
    """Pad + cast parameters ONCE at load time (hoisted out of the per-call path).

    Feature (lane) dims are zero-padded to multiples of `lane_align` so the kernel sees
    lane-dense tiles; padded columns/rows contribute exactly 0, so the math is unchanged.
    TODO(synk): at non-toy hidden sizes on v6e/v7x use lane_align=256 (2x256^2 MXU); keep 128 on v5e.
    """
    In, H = w1.shape
    O = w3.shape[1]
    H_p = _round_up(H, lane_align)
    O_p = _round_up(O, lane_align)
    bf16, f32 = jnp.bfloat16, jnp.float32

    w1p = jnp.zeros((In, H_p), bf16).at[:, :H].set(w1.astype(bf16))   # K (In) left unpadded
    b1p = jnp.zeros((1, H_p), f32).at[:, :H].set(b1.reshape(1, H).astype(f32))
    w2p = jnp.zeros((H_p, H_p), bf16).at[:H, :H].set(w2.astype(bf16))
    b2p = jnp.zeros((1, H_p), f32).at[:, :H].set(b2.reshape(1, H).astype(f32))
    w3p = jnp.zeros((H_p, O_p), bf16).at[:H, :O].set(w3.astype(bf16))
    b3p = jnp.zeros((1, O_p), f32).at[:, :O].set(b3.reshape(1, O).astype(f32))
    return jax.block_until_ready((w1p, b1p, w2p, b2p, w3p, b3p))


def _pick_tb(B, block_b):
    """Batch tile: multiple of 16, <= block_b, and >= 8 grid steps when B allows
    (2 TensorCores x ~4-deep pipeline on v7x) while amortizing per-step overhead."""
    tb = max(16, min(_round_up(block_b, 16), _round_up(B, 16)))
    while tb > 16 and pl.cdiv(B, tb) < 8:
        tb = max(16, _round_up(tb // 2, 16))
    return tb


@functools.partial(
    jax.jit, static_argnames=("hidden_features", "out_features", "block_b", "out_dtype"))
def mlp2d_forward(x, w1p, b1p, w2p, b2p, w3p, b3p, *, hidden_features, out_features,
                  block_b=512, out_dtype=jnp.float32):
    """x: (B, In) f32 (unpadded). w*p/b*p: outputs of prepare_mlp2d_params."""
    B, In = x.shape
    H = hidden_features
    O = out_features
    H_p = w1p.shape[1]
    O_p = w3p.shape[1]

    tb = _pick_tb(B, block_b)
    B_p = _round_up(B, tb)
    nb = B_p // tb
    if B_p != B:                                   # only the batch axis is (rarely) padded
        x = jnp.pad(x, ((0, B_p - B), (0, 0)))

    # <=128-row sub-chunks inside the kernel bound vreg pressure at large tb.
    chunk = min(tb, 128)
    n_chunks = tb // chunk

    def _resident(shape):
        # Grid-invariant block: single buffer (no pipelining benefit, halves resident VMEM).
        return pl.BlockSpec(shape, lambda i: (0, 0),
                            pipeline_mode=pl.Buffered(buffer_count=1))

    out_isz = np.dtype(out_dtype).itemsize

    # VMEM budget: single-buffered weights + double-buffered x/out tiles, capped well
    # below v7x's 64 MiB (v5e/v6e have 128 MiB physical so the cap never binds there).
    resident_bytes = ((w1p.size + w2p.size + w3p.size) * 2
                      + (b1p.size + b2p.size + b3p.size) * 4)
    io_bytes = 2 * (tb * In * 4 + tb * O_p * out_isz)
    vmem_limit = int(min(max(4 * (resident_bytes + io_bytes), 32 * 1024 * 1024),
                         48 * 1024 * 1024))

    # Cost estimate from TRUE (unpadded) dims.
    flops = 2 * B * (In * H + H * H + H * O)
    bytes_accessed = (B * In * 4
                      + (In * H + H * H + H * O) * 2 + (2 * H + O) * 4
                      + B * O * out_isz)

    out = pl.pallas_call(
        functools.partial(mlp2d_kernel, chunk=chunk, n_chunks=n_chunks),
        out_shape=jax.ShapeDtypeStruct((B_p, O_p), out_dtype),
        grid=(nb,),
        in_specs=[
            pl.BlockSpec((tb, In), lambda i: (i, 0)),  # x tile; K unpadded (== full array dim)
            _resident((In, H_p)),                      # w1 (resident, single-buffered)
            _resident((1, H_p)),                       # b1
            _resident((H_p, H_p)),                     # w2
            _resident((1, H_p)),                       # b2
            _resident((H_p, O_p)),                     # w3
            _resident((1, O_p)),                       # b3
        ],
        out_specs=pl.BlockSpec((tb, O_p), lambda i: (i, 0)),
        compiler_params=pltpu.CompilerParams(
            dimension_semantics=("parallel",),         # batch tiles independent -> megacore / 2 TCs
            vmem_limit_bytes=vmem_limit,
        ),
        cost_estimate=pl.CostEstimate(
            flops=flops, transcendentals=0, bytes_accessed=bytes_accessed),
    )(x, w1p, b1p, w2p, b2p, w3p, b3p)

    return out[:B, :O]


if __name__ == "__main__":
    # MLP2d(input_size=16, hidden_size=32, output_size=8); batch large enough to show tiling.
    B, IN, HID, OUT = 256, 16, 32, 8

    key = jax.random.PRNGKey(0)
    ks = jax.random.split(key, 7)
    x = jax.random.normal(ks[0], (B, IN), dtype=jnp.float32)

    def linear_init(kw, kb, fan_in, fan_out):
        # PyTorch nn.Linear default init bounds (uniform +/- 1/sqrt(fan_in)).
        bound = 1.0 / (fan_in ** 0.5)
        w = jax.random.uniform(kw, (fan_in, fan_out), minval=-bound, maxval=bound,
                               dtype=jnp.float32)
        b = jax.random.uniform(kb, (fan_out,), minval=-bound, maxval=bound,
                               dtype=jnp.float32)
        return w, b

    w1, b1 = linear_init(ks[1], ks[2], IN, HID)
    w2, b2 = linear_init(ks[3], ks[4], HID, HID)
    w3, b3 = linear_init(ks[5], ks[6], HID, OUT)

    # Padding / bf16 casts done once, outside the per-call path.
    params = prepare_mlp2d_params(w1, b1, w2, b2, w3, b3)

    out = mlp2d_forward(x, *params, hidden_features=HID, out_features=OUT)
    out = jax.block_until_ready(out)
    assert out.shape == (B, OUT)

    # Pure-JAX reference with the same precision policy (bf16 matmul inputs, f32 accumulate).
    bf16 = jnp.bfloat16
    h1 = jnp.maximum(
        jnp.dot(x.astype(bf16), w1.astype(bf16), preferred_element_type=jnp.float32) + b1, 0.0)
    h2 = jnp.maximum(
        jnp.dot(h1.astype(bf16), w2.astype(bf16), preferred_element_type=jnp.float32) + b2, 0.0)
    ref = jnp.dot(h2.astype(bf16), w3.astype(bf16), preferred_element_type=jnp.float32) + b3

    assert jnp.allclose(out, ref, atol=1e-2, rtol=1e-2), "mismatch vs reference"
    print("KERNEL_OK")
</pallas_src>

<mosaic_0001>
module attributes {stable_mosaic.version = 11 : i64} {
  func.func @mlp2d_kernel(%arg0: i32, %arg1: memref<32x16xf32, #tpu.memory_space<vmem>>, %arg2: memref<16x128xbf16, #tpu.memory_space<vmem>>, %arg3: memref<1x128xf32, #tpu.memory_space<vmem>>, %arg4: memref<128x128xbf16, #tpu.memory_space<vmem>>, %arg5: memref<1x128xf32, #tpu.memory_space<vmem>>, %arg6: memref<128x128xbf16, #tpu.memory_space<vmem>>, %arg7: memref<1x128xf32, #tpu.memory_space<vmem>>, %arg8: memref<32x128xf32, #tpu.memory_space<vmem>>) attributes {dimension_semantics = [#tpu.dimension_semantics<parallel>], iteration_bounds = array<i64: 8>, scalar_prefetch = 0 : i64, scratch_operands = 0 : i64, tpu.core_type = #tpu.core_type<tc>, window_params = [{transform_indices = @transform_0, window_bounds = array<i64: 32, 16>}, {pipeline_mode = #tpu.pipeline_mode<synchronous>, transform_indices = @transform_1, window_bounds = array<i64: 16, 128>}, {pipeline_mode = #tpu.pipeline_mode<synchronous>, transform_indices = @transform_2, window_bounds = array<i64: 1, 128>}, {pipeline_mode = #tpu.pipeline_mode<synchronous>, transform_indices = @transform_3, window_bounds = array<i64: 128, 128>}, {pipeline_mode = #tpu.pipeline_mode<synchronous>, transform_indices = @transform_4, window_bounds = array<i64: 1, 128>}, {pipeline_mode = #tpu.pipeline_mode<synchronous>, transform_indices = @transform_5, window_bounds = array<i64: 128, 128>}, {pipeline_mode = #tpu.pipeline_mode<synchronous>, transform_indices = @transform_6, window_bounds = array<i64: 1, 128>}, {transform_indices = @transform_7, window_bounds = array<i64: 32, 128>}]} {
    %c0 = arith.constant 0 : index
    %c0_0 = arith.constant 0 : index
    %0 = vector.load %arg2[%c0, %c0_0] : memref<16x128xbf16, #tpu.memory_space<vmem>>, vector<16x128xbf16>
    %c0_1 = arith.constant 0 : index
    %c0_2 = arith.constant 0 : index
    %1 = vector.load %arg3[%c0_1, %c0_2] : memref<1x128xf32, #tpu.memory_space<vmem>>, vector<1x128xf32>
    %c0_3 = arith.constant 0 : index
    %c0_4 = arith.constant 0 : index
    %2 = vector.load %arg4[%c0_3, %c0_4] : memref<128x128xbf16, #tpu.memory_space<vmem>>, vector<128x128xbf16>
    %c0_5 = arith.constant 0 : index
    %c0_6 = arith.constant 0 : index
    %3 = vector.load %arg5[%c0_5, %c0_6] : memref<1x128xf32, #tpu.memory_space<vmem>>, vector<1x128xf32>
    %c0_7 = arith.constant 0 : index
    %c0_8 = arith.constant 0 : index
    %4 = vector.load %arg6[%c0_7, %c0_8] : memref<128x128xbf16, #tpu.memory_space<vmem>>, vector<128x128xbf16>
    %c0_9 = arith.constant 0 : index
    %c0_10 = arith.constant 0 : index
    %5 = vector.load %arg7[%c0_9, %c0_10] : memref<1x128xf32, #tpu.memory_space<vmem>>, vector<1x128xf32>
    %c0_i32 = arith.constant 0 : i32
    %c32_i32 = arith.constant 32 : i32
    %6 = arith.muli %c0_i32, %c32_i32 : i32
    %7 = tpu.assume_multiple %6, 32 : i32
    %8 = arith.index_cast %7 : i32 to index
    %c0_11 = arith.constant 0 : index
    %9 = vector.load %arg1[%8, %c0_11] : memref<32x16xf32, #tpu.memory_space<vmem>>, vector<32x16xf32>
    %10 = arith.truncf %9 : vector<32x16xf32> to vector<32x16xbf16>
    %cst = arith.constant dense<0.000000e+00> : vector<32x128xf32>
    %11 = tpu.matmul %10, %0, %cst {dimension_numbers = #tpu.dot_dimension_numbers<[1], [0], [0], [1], [0, 0, 1, 1], [], []>} : vector<32x16xbf16>, vector<16x128xbf16>, vector<32x128xf32> -> vector<32x128xf32>
    %12 = vector.broadcast %1 : vector<1x128xf32> to vector<32x128xf32>
    %13 = arith.addf %11, %12 : vector<32x128xf32>
    %cst_12 = arith.constant 0.000000e+00 : f32
    %14 = vector.broadcast %cst_12 : f32 to vector<32x128xf32>
    %15 = arith.maximumf %13, %14 : vector<32x128xf32>
    %16 = arith.truncf %15 : vector<32x128xf32> to vector<32x128xbf16>
    %cst_13 = arith.constant dense<0.000000e+00> : vector<32x128xf32>
    %17 = tpu.matmul %16, %2, %cst_13 {dimension_numbers = #tpu.dot_dimension_numbers<[1], [0], [0], [1], [0, 0, 1, 1], [], []>} : vector<32x128xbf16>, vector<128x128xbf16>, vector<32x128xf32> -> vector<32x128xf32>
    %18 = vector.broadcast %3 : vector<1x128xf32> to vector<32x128xf32>
    %19 = arith.addf %17, %18 : vector<32x128xf32>
    %cst_14 = arith.constant 0.000000e+00 : f32
    %20 = vector.broadcast %cst_14 : f32 to vector<32x128xf32>
    %21 = arith.maximumf %19, %20 : vector<32x128xf32>
    %22 = arith.truncf %21 : vector<32x128xf32> to vector<32x128xbf16>
    %cst_15 = arith.constant dense<0.000000e+00> : vector<32x128xf32>
    %23 = tpu.matmul %22, %4, %cst_15 {dimension_numbers = #tpu.dot_dimension_numbers<[1], [0], [0], [1], [0, 0, 1, 1], [], []>} : vector<32x128xbf16>, vector<128x128xbf16>, vector<32x128xf32> -> vector<32x128xf32>
    %24 = vector.broadcast %5 : vector<1x128xf32> to vector<32x128xf32>
    %25 = arith.addf %23, %24 : vector<32x128xf32>
    %26 = arith.index_cast %7 : i32 to index
    %c0_16 = arith.constant 0 : index
    %27 = vector.load %arg8[%26, %c0_16] : memref<32x128xf32, #tpu.memory_space<vmem>>, vector<32x128xf32>
    tpu.vector_store %arg8[%26, %c0_16], %25 {strides = array<i32>} : memref<32x128xf32, #tpu.memory_space<vmem>>, vector<32x128xf32>,
    %c1_i32 = arith.constant 1 : i32
    return
  }
  func.func @transform_0(%arg0: i32) -> (i32, i32) {
    %c0_i32 = arith.constant 0 : i32
    %c0_i32_0 = arith.constant 0 : i32
    return %arg0, %c0_i32 : i32, i32
  }
  func.func @transform_1(%arg0: i32) -> (i32, i32) {
    %c0_i32 = arith.constant 0 : i32
    %c0_i32_0 = arith.constant 0 : i32
    %c0_i32_1 = arith.constant 0 : i32
    return %c0_i32, %c0_i32_0 : i32, i32
  }
  func.func @transform_2(%arg0: i32) -> (i32, i32) {
    %c0_i32 = arith.constant 0 : i32
    %c0_i32_0 = arith.constant 0 : i32
    %c0_i32_1 = arith.constant 0 : i32
    return %c0_i32, %c0_i32_0 : i32, i32
  }
  func.func @transform_3(%arg0: i32) -> (i32, i32) {
    %c0_i32 = arith.constant 0 : i32
    %c0_i32_0 = arith.constant 0 : i32
    %c0_i32_1 = arith.constant 0 : i32
    return %c0_i32, %c0_i32_0 : i32, i32
  }
  func.func @transform_4(%arg0: i32) -> (i32, i32) {
    %c0_i32 = arith.constant 0 : i32
    %c0_i32_0 = arith.constant 0 : i32
    %c0_i32_1 = arith.constant 0 : i32
    return %c0_i32, %c0_i32_0 : i32, i32
  }
  func.func @transform_5(%arg0: i32) -> (i32, i32) {
    %c0_i32 = arith.constant 0 : i32
    %c0_i32_0 = arith.constant 0 : i32
    %c0_i32_1 = arith.constant 0 : i32
    return %c0_i32, %c0_i32_0 : i32, i32
  }
  func.func @transform_6(%arg0: i32) -> (i32, i32) {
    %c0_i32 = arith.constant 0 : i32
    %c0_i32_0 = arith.constant 0 : i32
    %c0_i32_1 = arith.constant 0 : i32
    return %c0_i32, %c0_i32_0 : i32, i32
  }
  func.func @transform_7(%arg0: i32) -> (i32, i32) {
    %c0_i32 = arith.constant 0 : i32
    %c0_i32_0 = arith.constant 0 : i32
    return %arg0, %c0_i32 : i32, i32
  }
}

</mosaic_0001>

<bundles_post_ra>
// kernel: mlp2d_forward.1
= control target key start
LH: loop header
LB: loop body
LE: loop exit
PB: predicated region body
PF: predicated region fallthrough
CT: control target
= control target key end

     0   :  { %s746_s24 = smov 0   ;;  %s830_s0 = inlined_call_operand.vmem [shape: f32[256,16], index: 0, kind: input, shape index: {}]   ;;  %s831_s1 = inlined_call_operand.vmem [shape: bf16[16,128], index: 1, kind: input, shape index: {}]   ;;  %s832_s2 = inlined_call_operand.vmem [shape: f32[1,128], index: 2, kind: input, shape index: {}]   ;;  %s833_s3 = inlined_call_operand.vmem [shape: bf16[128,128], index: 3, kind: input, shape index: {}]   ;;  %s834_s4 = inlined_call_operand.vmem [shape: f32[1,128], index: 4, kind: input, shape index: {}]   ;;  %s835_s5 = inlined_call_operand.vmem [shape: bf16[128,128], index: 5, kind: input, shape index: {}]   ;;  %s836_s6 = inlined_call_operand.vmem [shape: f32[1,128], index: 6, kind: input, shape index: {}]   ;;  %s837_s7 = inlined_call_operand.vmem [shape: f32[256,128], index: 7, kind: output, shape index: {}]  }
   0x1 LB: > { %s573_s25 = sadd.s32 4294967295, %s704_s24   ;;  %p577_p0 = scmp.ge.s32.totalorder %s704_s24, 1  ;;  %s704_s24 = sphi %s746_s24, %s17_s24  }
   0x2   : > { %p238_p1 = scmp.lt.s32.totalorder %s704_s24, 9 }
   0x4   : > { %p239_p2 = pnand %p577_p0, %p238_p1 }
   0x5   : > { %s578_s28 = sshll.u32 (!%p239_p2), %s573_s25, 2 }
   0x6   : > { %242 = sbr.rel (%p239_p2) target bundleno = 462 (0x1ce), region = 48  ;;  %p271_p3 = scmp.lt.s32.totalorder (!%p239_p2), %s578_s28, 31 }
   0xb   : > { %v654_v0 = vld [vmem:[%s831_s1] sm:$0xff]  ;;  %v662_v1 = vld [vmem:[%s833_s3 + $0x38] sm:$0xff]  ;;  %v661_v2 = vld [vmem:[%s833_s3 + $0x30] sm:$0xff]  ;;  %s839_s28 = smov (!%p271_p3, %s578_s28), 31  ;;  %vm335_vm0 = vcmask 130048  }
   0xc   : > { %349 = vmatpush.bf16.msra.mxu0 %v654_v0  ;;  %418 = vmatpush.bf16.msra.mxu1 %v662_v1  ;;  %s579_s10 = sshll.u32 %s839_s28, 3  ;;  %v660_v3 = vld [vmem:[%s833_s3 + $0x28] sm:$0xff]  ;;  %v659_v7 = vld [vmem:[%s833_s3 + $0x20] sm:$0xff]  ;;  %v658_v11 = vld [vmem:[%s833_s3 + $0x18] sm:$0xff] }
   0xd   : > { %671 = vmatpush.bf16.msra.mxu3 %v662_v1  ;;  %s274_s13 = scalar_lea.vmem %s830_s0, %s579_s10  ;;  %v657_v12 = vld [vmem:[%s833_s3 + $0x10] sm:$0xff]  ;;  %v656_v13 = vld [vmem:[%s833_s3 + $0x8] sm:$0xff]  ;;  %v655_v14 = vld [vmem:[%s833_s3] sm:$0xff]  ;;  %s280_s9 = scalar_lea.vmem %s837_s7, %s579_s10 }
   0xe   : > { %v320_v4 = vld [vmem:[%s274_s13] sm:$0xff]  ;;  %v321_v5 = vld [vmem:[%s274_s13 + $0x8] sm:$0xff]  ;;  %v322_v8 = vld [vmem:[%s274_s13 + $0x10] sm:$0xff] }
   0xf   : > { %v324_v6 = vpack.c.bf16 %v321_v5, %v320_v4  ;;  %v323_v9 = vld [vmem:[%s274_s13 + $0x18] sm:$0xff]  ;;  %v669_v17 = vld [vmem:[%s835_s5 + $0x30] sm:$0xff]  ;;  %v695_v18 = vld [vmem:[%s832_s2] ss:$0 sm:$0xff] }
  0x10   : > { %419 = vmatpush.bf16.msra.mxu1 %v661_v2  ;;  %v325_v10 = vpack.c.bf16 %v323_v9, %v322_v8  ;;  %v670_v15 = vld [vmem:[%s835_s5 + $0x38] sm:$0xff]  ;;  %v668_v19 = vld [vmem:[%s835_s5 + $0x28] sm:$0xff]  ;;  %v667_v23 = vld [vmem:[%s835_s5 + $0x20] sm:$0xff] }
  0x11   : > { %672 = vmatpush.bf16.msra.mxu3 %v661_v2  ;;  %586 = vmatmul.msk.bf16.vlgmr.msra.gmra.mxu0 %vm335_vm0, %v324_v6  ;;  %v666_v34 = vld [vmem:[%s835_s5 + $0x18] sm:$0xff]  ;;  %v665_v35 = vld [vmem:[%s835_s5 + $0x10] sm:$0xff]  ;;  %v664_v36 = vld [vmem:[%s835_s5 + $0x8] sm:$0xff] }
  0x12   : > { %494 = vmatpush.bf16.msrb.mxu0 %v670_v15  ;;  %679 = vmatpush.bf16.msra.mxu2 %v670_v15  ;;  %v663_v37 = vld [vmem:[%s835_s5] sm:$0xff] }
  0x13   : > { %v696_v39 = vld [vmem:[%s834_s4] ss:$0 sm:$0xff] }
  0x14   : > { %420 = vmatpush.bf16.msra.mxu1 %v660_v3  ;;  %v697_v53 = vld [vmem:[%s836_s6] ss:$0 sm:$0xff] }
  0x15   : > { %673 = vmatpush.bf16.msra.mxu3 %v660_v3 }
  0x16   : > { %495 = vmatpush.bf16.msrb.mxu0 %v669_v17  ;;  %680 = vmatpush.bf16.msra.mxu2 %v669_v17 }
  0x18   : > { %421 = vmatpush.bf16.msra.mxu1 %v659_v7 }
  0x19   : > { %674 = vmatpush.bf16.msra.mxu3 %v659_v7 }
  0x1a   : > { %496 = vmatpush.bf16.msrb.mxu0 %v668_v19  ;;  %681 = vmatpush.bf16.msra.mxu2 %v668_v19 }
  0x1c   : > { %422 = vmatpush.bf16.msra.mxu1 %v658_v11 }
  0x1d   : > { %675 = vmatpush.bf16.msra.mxu3 %v658_v11 }
  0x1e   : > { %497 = vmatpush.bf16.msrb.mxu0 %v667_v23  ;;  %682 = vmatpush.bf16.msra.mxu2 %v667_v23 }
  0x20   : > { %423 = vmatpush.bf16.msra.mxu1 %v657_v12 }
  0x21   : > { %587 = vmatmul.msk.bf16.gmra.mxu0 %vm335_vm0, %v325_v10  ;;  %676 = vmatpush.bf16.msra.mxu3 %v657_v12 }
  0x22   : > { %498 = vmatpush.bf16.msrb.mxu0 %v666_v34  ;;  %683 = vmatpush.bf16.msra.mxu2 %v666_v34 }
  0x24   : > { %424 = vmatpush.bf16.msra.mxu1 %v656_v13 }
  0x25   : > { %677 = vmatpush.bf16.msra.mxu3 %v656_v13 }
  0x26   : > { %499 = vmatpush.bf16.msrb.mxu0 %v665_v35  ;;  %684 = vmatpush.bf16.msra.mxu2 %v665_v35 }
  0x28   : > { %425 = vmatpush.bf16.msra.mxu1 %v655_v14 }
  0x29   : > { %678 = vmatpush.bf16.msra.mxu3 %v655_v14 }
  0x2a   : > { %500 = vmatpush.bf16.msrb.mxu0 %v664_v36  ;;  %685 = vmatpush.bf16.msra.mxu2 %v664_v36 }
  0x2e   : > { %501 = vmatpush.bf16.msrb.mxu0 %v663_v37  ;;  %686 = vmatpush.bf16.msra.mxu2 %v663_v37 }
  0x8e   : > { %v351_v16 = vpop.f32.mrf.mxu0 }
  0x8f   : > { %v352_v20 = vadd.f32 %v695_v18, %v351_v16 }
  0x91   : > { %v361_v24 = vmax.f32 %v352_v20, 0.0 }
  0x96   : > { %v353_v21 = vpop.f32.mrf.mxu0 }
  0x97   : > { %v354_v22 = vadd.f32 %v695_v18, %v353_v21 }
  0x99   : > { %v362_v25 = vmax.f32 %v354_v22, 0.0 }
  0x9b   : > { %v365_v26 = vpack.c.bf16 %v362_v25, %v361_v24 }
  0x9d   : > { %426 = vmatmul.bf16.vlgmr.msra.gmra.mxu1 %v365_v26 }
  0x9e   : > { %v356_v27 = vpop.f32.mrf.mxu0 }
  0x9f   : > { %v357_v28 = vadd.f32 %v695_v18, %v356_v27 }
  0xa1   : > { %v363_v31 = vmax.f32 %v357_v28, 0.0 }
  0xa6   : > { %v358_v29 = vpop.f32.mrf.mxu0 }
  0xa7   : > { %v359_v30 = vadd.f32 %v695_v18, %v358_v29 }
  0xa9   : > { %v364_v32 = vmax.f32 %v359_v30, 0.0 }
  0xab   : > { %v366_v33 = vpack.c.bf16 %v364_v32, %v363_v31 }
  0xad   : > { %431 = vmatmul.bf16.vlgmr.msra.gmra.mxu3 %v366_v33 }
 0x11a   : > { %v427_v38 = vpop.f32.mrf.mxu1 }
 0x11b   : > { %v428_v40 = vadd.f32 %v696_v39, %v427_v38 }
 0x11d   : > { %v437_v43 = vmax.f32 %v428_v40, 0.0 }
 0x122   : > { %v429_v41 = vpop.f32.mrf.mxu1 }
 0x123   : > { %v430_v42 = vadd.f32 %v696_v39, %v429_v41 }
 0x125   : > { %v438_v44 = vmax.f32 %v430_v42, 0.0 }
 0x127   : > { %v441_v45 = vpack.c.bf16 %v438_v44, %v437_v43 }
 0x129   : > { %502 = vmatmul.bf16.vlgmr.msrb.gmra.mxu0 %v441_v45 }
 0x130   : > { %v432_v46 = vpop.f32.mrf.mxu3 }
 0x131   : > { %v433_v47 = vadd.f32 %v696_v39, %v432_v46 }
 0x133   : > { %v439_v50 = vmax.f32 %v433_v47, 0.0 }
 0x138   : > { %v434_v48 = vpop.f32.mrf.mxu3 }
 0x139   : > { %v435_v49 = vadd.f32 %v696_v39, %v434_v48 }
 0x13b   : > { %v440_v51 = vmax.f32 %v435_v49, 0.0 }
 0x13d   : > { %v442_v52 = vpack.c.bf16 %v440_v51, %v439_v50 }
 0x13f   : > { %507 = vmatmul.bf16.vlgmr.msra.gmra.mxu2 %v442_v52 }
 0x1a6   : > { %v503_v54 = vpop.f32.mrf.mxu0 }
 0x1a7   : > { %v504_v55 = vadd.f32 %v697_v53, %v503_v54 }
 0x1a9   : > { %513 = vst [vmem:[%s280_s9] sm:$0xff] %v504_v55 }
 0x1ae   : > { %v505_v56 = vpop.f32.mrf.mxu0 }
 0x1af   : > { %v506_v57 = vadd.f32 %v697_v53, %v505_v56 }
 0x1b1   : > { %514 = vst [vmem:[%s280_s9 + $0x8] sm:$0xff] %v506_v57 }
 0x1c2   : > { %v508_v58 = vpop.f32.mrf.mxu2 }
 0x1c3   : > { %v509_v59 = vadd.f32 %v697_v53, %v508_v58 }
 0x1c5   : > { %515 = vst [vmem:[%s280_s9 + $0x10] sm:$0xff] %v509_v59 }
 0x1ca   : > { %v510_v60 = vpop.f32.mrf.mxu2 }
 0x1cb   : > { %v511_v61 = vadd.f32 %v697_v53, %v510_v60 }
 0x1cd   : > { %516 = vst [vmem:[%s280_s9 + $0x18] sm:$0xff] %v511_v61 }
 0x1ce PF: > { %s17_s24 = sadd.s32 1, %s704_s24  }
 0x1cf   : > { %p14_p4 = scmp.ge.s32.totalorder %s17_s24, 10  }
 0x1d1   :  { %16 = sbr.rel (!%p14_p4) target bundleno = 1 (0x1), region = 78 }

</bundles_post_ra>
